<compile_context>
chip_gen: v7x
topology: tpu7x:2x2x1
jax: 0.10.0
libtpu: 0.0.40
codegen_flags: <defaults>
</compile_context>

<pallas_src>
import jax
import jax.numpy as jnp
from jax.experimental import pallas as pl
from jax.experimental.pallas import tpu as pltpu


def _round_up(x: int, m: int) -> int:
    return ((x + m - 1) // m) * m


def _propen_head_kernel(x_ref, w_ref, b_ref, o_ref):
    # x_ref: (TM, F) f32 activations, w_ref: (1, F) f32 weight row (zero past D),
    # b_ref: (1, 1) f32 in SMEM, o_ref: (TM, 1) f32 output.
    x = x_ref[...]                                       # contiguous (TM, F) load
    w = w_ref[...]                                       # (1, F) broadcast row
    # Linear(D, 1) == sum over the first D lanes; zero-padded weight makes the
    # full-width multiply/reduce exactly equivalent (VPU mul + XLU reduce).
    y = jnp.sum(x * w, axis=-1, keepdims=True) + b_ref[0, 0]
    o_ref[...] = jax.nn.sigmoid(y).astype(o_ref.dtype)   # sigmoid rides the EUP slot


def custom_propen_head_forward(out, weight, bias, *, model_out_dim, tile_m=1024):
    """out: (B, F) f32 with F >= model_out_dim, weight: (1, D) f32, bias: (1,) f32.

    Returns sigmoid(out[:, :D] @ weight.T + bias) as (B, 1) f32.
    """
    B, F = out.shape
    D = model_out_dim
    assert F >= D, "feature width must be at least model_out_dim"

    # Zero-pad the weight to the full feature width: avoids an in-kernel lane
    # slice at a non-128-aligned offset. Parameters-only, done once in XLA.
    w_row = jnp.zeros((1, F), dtype=jnp.float32)
    w_row = w_row.at[0, :D].set(weight.reshape(-1).astype(jnp.float32))
    b2 = jnp.asarray(bias, dtype=jnp.float32).reshape(1, 1)

    # Row tile: big enough to amortize per-step overhead, tiny in VMEM
    # (TM=1024 x F=64 f32 = 256 KiB/tile, safe even for v7x's 64 MiB VMEM).
    tm = min(tile_m, _round_up(B, 8))
    grid = (pl.cdiv(B, tm),)

    return pl.pallas_call(
        _propen_head_kernel,
        out_shape=jax.ShapeDtypeStruct((B, 1), jnp.float32),
        grid_spec=pltpu.PrefetchScalarGridSpec(
            num_scalar_prefetch=0,
            grid=grid,
            in_specs=[
                pl.BlockSpec((tm, F), lambda i: (i, 0)),            # activations tile
                pl.BlockSpec((1, F), lambda i: (0, 0)),             # padded weight row
                pl.BlockSpec(memory_space=pltpu.SMEM),              # scalar bias
            ],
            out_specs=pl.BlockSpec((tm, 1), lambda i: (i, 0)),
        ),
        compiler_params=pltpu.CompilerParams(
            dimension_semantics=("parallel",),                       # v7x: 2 TCs share B
        ),
    )(out, w_row, b2)


if __name__ == "__main__":
    B, D = 8, 32                 # model_out_dim = 32, input feature width = 2*D = 64
    key = jax.random.PRNGKey(0)
    k_out, k_w, k_b = jax.random.split(key, 3)

    out = jax.random.normal(k_out, (B, 2 * D), dtype=jnp.float32)

    # nn.Linear(D, 1) default init: U(-1/sqrt(D), 1/sqrt(D)).
    bound = 1.0 / (D ** 0.5)
    w = jax.random.uniform(k_w, (1, D), minval=-bound, maxval=bound, dtype=jnp.float32)
    b = jax.random.uniform(k_b, (1,), minval=-bound, maxval=bound, dtype=jnp.float32)

    y = custom_propen_head_forward(out, w, b, model_out_dim=D)
    y = jax.block_until_ready(y)

    # Pure-JAX reference: sigmoid(out[:, :D] @ w.T + b).
    y_ref = jax.nn.sigmoid(out[:, :D] @ w.T + b)
    assert y.shape == (B, 1)
    assert jnp.allclose(y, y_ref, atol=1e-5, rtol=1e-5)

    print("KERNEL_OK")
</pallas_src>

<mosaic_0001>
module attributes {stable_mosaic.version = 11 : i64} {
  func.func @_propen_head_kernel(%arg0: i32, %arg1: memref<8x64xf32, #tpu.memory_space<vmem>>, %arg2: memref<1x64xf32, #tpu.memory_space<vmem>>, %arg3: memref<1x1xf32, #tpu.memory_space<smem>>, %arg4: memref<8x1xf32, #tpu.memory_space<vmem>>) attributes {dimension_semantics = [#tpu.dimension_semantics<parallel>], iteration_bounds = array<i64: 1>, scalar_prefetch = 0 : i64, scratch_operands = 0 : i64, tpu.core_type = #tpu.core_type<tc>, window_params = [{transform_indices = @transform_0, window_bounds = array<i64: 8, 64>}, {pipeline_mode = #tpu.pipeline_mode<synchronous>, transform_indices = @transform_1, window_bounds = array<i64: 1, 64>}, {transform_indices = @transform_2, window_bounds = array<i64: 1, 1>}, {transform_indices = @transform_3, window_bounds = array<i64: 8, 1>}]} {
    %c0 = arith.constant 0 : index
    %c0_0 = arith.constant 0 : index
    %0 = vector.load %arg1[%c0, %c0_0] : memref<8x64xf32, #tpu.memory_space<vmem>>, vector<8x64xf32>
    %c0_1 = arith.constant 0 : index
    %c0_2 = arith.constant 0 : index
    %1 = vector.load %arg2[%c0_1, %c0_2] : memref<1x64xf32, #tpu.memory_space<vmem>>, vector<1x64xf32>
    %2 = vector.broadcast %1 : vector<1x64xf32> to vector<8x64xf32>
    %3 = arith.mulf %0, %2 : vector<8x64xf32>
    %cst = arith.constant dense<0.000000e+00> : vector<8xf32>
    %4 = vector.multi_reduction <add>, %3, %cst [1] : vector<8x64xf32> to vector<8xf32>
    %5 = vector.shape_cast %4 : vector<8xf32> to vector<8x1xf32>
    %c0_3 = arith.constant 0 : index
    %c0_4 = arith.constant 0 : index
    %6 = memref.load %arg3[%c0_3, %c0_4] : memref<1x1xf32, #tpu.memory_space<smem>>
    %7 = vector.broadcast %6 : f32 to vector<8x1xf32>
    %8 = arith.addf %5, %7 : vector<8x1xf32>
    %9 = arith.negf %8 : vector<8x1xf32>
    %10 = math.exp %9 : vector<8x1xf32>
    %cst_5 = arith.constant 1.000000e+00 : f32
    %11 = vector.broadcast %cst_5 : f32 to vector<8x1xf32>
    %12 = arith.addf %11, %10 : vector<8x1xf32>
    %13 = arith.divf %11, %12 : vector<8x1xf32>
    %c0_6 = arith.constant 0 : index
    %c0_7 = arith.constant 0 : index
    %14 = vector.load %arg4[%c0_6, %c0_7] : memref<8x1xf32, #tpu.memory_space<vmem>>, vector<8x1xf32>
    tpu.vector_store %arg4[%c0_6, %c0_7], %13 {strides = array<i32>} : memref<8x1xf32, #tpu.memory_space<vmem>>, vector<8x1xf32>,
    return
  }
  func.func @transform_0(%arg0: i32) -> (i32, i32) {
    %c0_i32 = arith.constant 0 : i32
    %c0_i32_0 = arith.constant 0 : i32
    return %arg0, %c0_i32 : i32, i32
  }
  func.func @transform_1(%arg0: i32) -> (i32, i32) {
    %c0_i32 = arith.constant 0 : i32
    %c0_i32_0 = arith.constant 0 : i32
    %c0_i32_1 = arith.constant 0 : i32
    return %c0_i32, %c0_i32_0 : i32, i32
  }
  func.func @transform_2(%arg0: i32) -> (i32, i32) {
    %c0_i32 = arith.constant 0 : i32
    %c0_i32_0 = arith.constant 0 : i32
    %c0_i32_1 = arith.constant 0 : i32
    return %c0_i32, %c0_i32_0 : i32, i32
  }
  func.func @transform_3(%arg0: i32) -> (i32, i32) {
    %c0_i32 = arith.constant 0 : i32
    %c0_i32_0 = arith.constant 0 : i32
    return %arg0, %c0_i32 : i32, i32
  }
}

</mosaic_0001>

<bundles_post_ra>
// kernel: tpu_custom_call.1
= control target key start
LH: loop header
LB: loop body
LE: loop exit
PB: predicated region body
PF: predicated region fallthrough
CT: control target
= control target key end

     0   :  { %9 = vsyncpa [#allocation4], 0  ;;  %s87_s12 = smov [#allocation3]   ;;  %s129_s0 = inlined_call_operand.hbm [shape: f32[8,64], index: 0, kind: input, shape index: {}]   ;;  %s130_s1 = inlined_call_operand.vmem [shape: f32[1,64], index: 1, kind: input, shape index: {}]   ;;  %s131_s2 = inlined_call_operand.<no memory space> [shape: f32[1,1], index: 2, kind: input, shape index: {}]   ;;  %s132_s3 = inlined_call_operand.vmem [shape: f32[8,1], index: 3, kind: output, shape index: {}]  }
   0x1   :  { %s16_s13 = sshll.u32 %s87_s12, 4  ;;  %s63_s16 = scalar_lea.hbm %s129_s0, 128  ;;  %s17_s13 = int_to_ptr.vmem [resolvable:$true] %s16_s13 }
   0x2   :  { %p64_p0 = scmp.ne.s32.totalorder %s129_s0, %s63_s16  ;;  %p67_p1 = scmp.lt.u32.totalorder %s63_s16, %s129_s0 }
   0x4   :  { %p69_p2 = pnand %p67_p1, %p64_p0 }
   0x6   :  { %72 = shalt.err (!%p69_p2)
}
   0x7   :  { %s73_s21 = scalar_lea.vmem %s17_s13, 128  ;;  %p78_p4 = scmp.lt.s32.totalorder %s17_s13, %s17_s13 }
   0x8   :  { %p74_p3 = scmp.ne.s32.totalorder %s17_s13, %s73_s21  ;;  %p79_p5 = scmp.lt.s32.totalorder %s73_s21, %s73_s21 }
   0xa   :  { %p80_p6 = por %p79_p5, %p78_p4 }
   0xc   :  { %p81_p7 = pnand %p80_p6, %p74_p3 }
   0xe   :  { %84 = shalt.err (!%p81_p7)
}
   0xf   :  { %19 = dma.hbm_to_vmem [thread:$0]  %s129_s0, 128, %s17_s13, [#allocation4]  }
  0x10   :  { %85 = dma.done.wait [#allocation4], 128  }
  0x11   :  { %86 = vsyncadd [#allocation4], 4294967168  ;;  %v27_v0 = vld [vmem:[#allocation3] sm:$0xff]  ;;  %vm36_vm0 = vcmask 523264   ;;  %v41_v4 = vstv %s131_s2  ;;  %vm49_vm1 = vcmask 7168  }
  0x12   :  { %v56_v1 = vld [vmem:[%s130_s1] ss:$0 sm:$0xff] }
  0x13   :  { %v35_v2 = vmul.f32 %v56_v1, %v27_v0 }
  0x15   :  { %v37_v3 = vsel %vm36_vm0, %v35_v2, 0.0 }
  0x16   :  { %38 = vadd.xlane.f32.xlu0 %v37_v3 }
  0xa3   :  { %v39_v5 = vpop.xlane.xlu0 %38 }
  0xa4   :  { %v42_v6 = vadd.f32 %v41_v4, %v39_v5 }
  0xa6   :  { %v57_v7 = vmul.f32 -1.442695, %v42_v6 }
  0xa8   :  { %59 = vpow2.f32 %v57_v7 }
  0xb2   :  { %v60_v8 = vpop.eup %59 }
  0xb3   :  { %v46_v9 = vadd.f32 1.0, %v60_v8 }
  0xb5   :  { %61 = vrcp.f32 %v46_v9 }
  0xbf   :  { %v62_v10 = vpop.eup %61 }
  0xc0   :  { %50 = vst.msk [vmem:[%s132_s3] sm:$0xff] %vm49_vm1, %v62_v10 }
  0xc1   :  { %55 = vsyncpa [#allocation4], 1 }

</bundles_post_ra>
